<compile_context>
chip_gen: v6e
topology: v6e:2x2x1
jax: 0.10.0
libtpu: 0.0.40
codegen_flags: <defaults>
</compile_context>

<pallas_src>
import functools

import jax
import jax.numpy as jnp
import numpy as np
from jax import lax
from jax.experimental import pallas as pl
from jax.experimental.pallas import tpu as pltpu

_LANE = 128
_EPS = 1e-7
# clip(sigmoid(x), e, 1-e) == sigmoid(clip(x, -C, C)),  C = log((1-e)/e)
_CLAMP = float(np.log((1.0 - _EPS) / _EPS))
_SLAB_ROWS = 256        # rows per inner accumulation step (bounds temporaries)
_MAX_TILE_ROWS = 2048   # (2048,128) f32 tile = 1 MiB; 2 inputs x 2 bufs = 4 MiB


def _round_up(v, m):
    return (v + m - 1) // m * m


def _num_parallel_cores():
    """TensorCores a 'parallel' leading grid axis can be sharded across."""
    try:
        kind = jax.devices()[0].device_kind.lower().replace(" ", "")
    except Exception:
        return 1
    # v7x has 2 TCs/chip; v4/v5p megacore exposes 2 cores behind one device.
    # TODO(synk): if "parallel" does not actually shard across v7x's two TCs,
    # switch this axis to pltpu.CORE_PARALLEL.
    if "v7" in kind or "7x" in kind or "v4" in kind or "v5p" in kind:
        return 2
    return 1


def _combo_partial_kernel(x_ref, t_ref, out_ref, acc_ref, *,
                          tile_rows, slab_rows, tiles_per_core,
                          n_full_rows, rem_lanes, needs_mask):
    """Accumulate the 5 partial sums ComboLoss needs into VMEM scratch.

    acc rows:  0: sum(sigmoid * t)   1: sum(sigmoid)   2: sum(t)
               3: sum(t * log(sc))   4: sum((1-t) * log(1-sc))
    """
    c = pl.program_id(0)   # parallel (core) axis
    i = pl.program_id(1)   # sequential reduction axis

    @pl.when(i == 0)
    def _():
        acc_ref[...] = jnp.zeros_like(acc_ref)

    tile_base_row = (c * tiles_per_core + i) * tile_rows
    n_slabs = tile_rows // slab_rows

    def fold(v):            # (slab_rows,128) -> (8,128) sublane-aligned adds
        return jnp.sum(v.reshape(slab_rows // 8, 8, _LANE), axis=0)

    def slab_sums(r0, valid):
        x = x_ref[pl.ds(r0, slab_rows), :].astype(jnp.float32)
        t = t_ref[pl.ds(r0, slab_rows), :].astype(jnp.float32)
        if valid is not None:                 # NaN-safe masking of boundary data
            x = jnp.where(valid, x, 0.0)
            t = jnp.where(valid, t, 0.0)
        # One exp + one log + one exp per element (all EUP); no VPU divide.
        xc = jnp.clip(x, -_CLAMP, _CLAMP)
        z = jnp.exp(-xc)                      # EUP
        log_d = jnp.log(1.0 + z)              # EUP
        log_s = -log_d                        # log(clip(sigmoid(x), e, 1-e))
        log_1ms = -xc - log_d                 # log(1 - clip(sigmoid(x), e, 1-e))
        s = jnp.exp(log_s)                    # EUP; sigmoid of the clamped logit
        ce_neg = (1.0 - t) * log_1ms
        if valid is not None:
            s = jnp.where(valid, s, 0.0)      # masked x=0 would give sigmoid 0.5
            ce_neg = jnp.where(valid, ce_neg, 0.0)
        return (fold(s * t), fold(s), fold(t), fold(t * log_s), fold(ce_neg))

    def accumulate(make_valid):
        def step(r0, carry):
            return tuple(a + p for a, p in zip(carry, slab_sums(r0, make_valid(r0))))
        init = tuple(jnp.zeros((8, _LANE), jnp.float32) for _ in range(5))
        if n_slabs == 1:
            parts = step(0, init)
        else:
            parts = lax.fori_loop(
                0, n_slabs,
                lambda si, cr: step(pl.multiple_of(si * slab_rows, slab_rows), cr),
                init)
        for k in range(5):
            acc_ref[k] += parts[k]

    def run_unmasked():
        accumulate(lambda r0: None)

    def run_masked():
        row_io = lax.broadcasted_iota(jnp.int32, (slab_rows, _LANE), 0)
        lane_io = (lax.broadcasted_iota(jnp.int32, (slab_rows, _LANE), 1)
                   if rem_lanes else None)

        def make_valid(r0):
            grow = tile_base_row + r0 + row_io      # global row id (int32)
            valid = grow < n_full_rows
            if rem_lanes:
                valid = valid | ((grow == n_full_rows) & (lane_io < rem_lanes))
            return valid

        accumulate(make_valid)

    if needs_mask:
        # Only the boundary tile (and clamped dummy steps) pays for the mask.
        interior = tile_base_row + tile_rows <= n_full_rows
        pl.when(interior)(run_unmasked)
        pl.when(jnp.logical_not(interior))(run_masked)
    else:
        run_unmasked()

    @pl.when(i == tiles_per_core - 1)
    def _():
        out_ref[...] = acc_ref[...]


def combo_loss(inputs, targets, *, alpha=0.5, ce_ratio=0.5, smooth=1.0):
    """Pallas implementation of ComboLoss.forward. Returns a scalar f32."""
    x = jnp.ravel(inputs)        # native dtype; cast happens per-slab in-kernel
    t = jnp.ravel(targets)
    n_valid = x.shape[0]

    n_full_rows, rem_lanes = divmod(n_valid, _LANE)
    n_rows = n_full_rows + (1 if rem_lanes else 0)
    if rem_lanes:
        # Rare fallback (flat size not a multiple of 128): pad to a full lane
        # row.  TODO(synk): a copy-free 1-D ragged tail path could remove this.
        pad = n_rows * _LANE - n_valid
        x = jnp.pad(x, (0, pad))
        t = jnp.pad(t, (0, pad))
    x2 = x.reshape(n_rows, _LANE)   # free reshape of the flat array
    t2 = t.reshape(n_rows, _LANE)

    n_cores = _num_parallel_cores()
    if n_rows >= n_cores * _SLAB_ROWS:
        # Big input: big tiles, slab-wise accumulation, no copies; the last
        # block may be partial and is masked in-kernel.
        slab_rows = _SLAB_ROWS
        tile_rows = min(_MAX_TILE_ROWS,
                        _round_up(pl.cdiv(n_rows, n_cores), _SLAB_ROWS))
        arr_rows = n_rows
    else:
        # Small input (< 256*n_cores rows): single core, one exact tile.  A
        # tiny (<32K element) row-alignment pad keeps block == array.
        n_cores = 1
        tile_rows = _round_up(n_rows, 8)
        slab_rows = tile_rows
        arr_rows = tile_rows
        if arr_rows != n_rows:
            x2 = jnp.pad(x2, ((0, arr_rows - n_rows), (0, 0)))
            t2 = jnp.pad(t2, ((0, arr_rows - n_rows), (0, 0)))

    tiles_per_core = pl.cdiv(arr_rows, n_cores * tile_rows)
    num_blocks = pl.cdiv(arr_rows, tile_rows)       # real blocks in the array
    needs_mask = (n_cores * tiles_per_core * tile_rows * _LANE != n_valid)

    kernel = functools.partial(
        _combo_partial_kernel,
        tile_rows=tile_rows, slab_rows=slab_rows, tiles_per_core=tiles_per_core,
        n_full_rows=n_full_rows, rem_lanes=rem_lanes, needs_mask=needs_mask)

    def in_index(c, i):
        # Clamp so trailing dummy grid steps never DMA a fully-OOB block; the
        # in-kernel mask zeroes their contribution.
        return (jnp.minimum(c * tiles_per_core + i, num_blocks - 1), 0)

    in_spec = pl.BlockSpec((tile_rows, _LANE), in_index)
    partials = pl.pallas_call(
        kernel,
        out_shape=jax.ShapeDtypeStruct((n_cores, 5, 8, _LANE), jnp.float32),
        grid_spec=pltpu.PrefetchScalarGridSpec(
            num_scalar_prefetch=0,
            grid=(n_cores, tiles_per_core),
            in_specs=[in_spec, in_spec],
            out_specs=pl.BlockSpec((None, 5, 8, _LANE), lambda c, i: (c, 0, 0, 0)),
            scratch_shapes=[pltpu.VMEM((5, 8, _LANE), jnp.float32)],
        ),
        compiler_params=pltpu.CompilerParams(
            dimension_semantics=("parallel", "arbitrary"),
            vmem_limit_bytes=32 * 1024 * 1024),
    )(x2, t2)

    # Tiny scalar finalize in JAX: alpha / ce_ratio / smooth never enter the
    # kernel, so traced hyper-parameters are safe.
    sums = jnp.sum(partials, axis=(0, 2, 3))            # (5,) f32
    intersection, s_sum, t_sum, ce_pos, ce_neg = (sums[k] for k in range(5))
    dice = (2.0 * intersection + smooth) / (s_sum + t_sum + smooth)
    weighted_ce = -(alpha * ce_pos + (1.0 - alpha) * ce_neg) / n_valid
    return ce_ratio * weighted_ce - (1.0 - ce_ratio) * dice


def _combo_loss_ref(inputs, targets, *, alpha=0.5, ce_ratio=0.5, smooth=1.0):
    e = 1e-07
    s = jax.nn.sigmoid(inputs.astype(jnp.float32)).reshape(-1)
    t = targets.astype(jnp.float32).reshape(-1)
    intersection = jnp.sum(s * t)
    dice = (2.0 * intersection + smooth) / (jnp.sum(s) + jnp.sum(t) + smooth)
    sc = jnp.clip(s, e, 1.0 - e)
    out = -(alpha * (t * jnp.log(sc)) +
            (1.0 - alpha) * (1.0 - t) * jnp.log(1.0 - sc))
    weighted_ce = jnp.mean(out)
    return ce_ratio * weighted_ce - (1.0 - ce_ratio) * dice


if __name__ == "__main__":
    key = jax.random.PRNGKey(0)
    k1, k2, k3, k4 = jax.random.split(key, 4)

    # Primary shape: small segmentation logits (N, C, H, W), lane-aligned.
    x = jax.random.normal(k1, (2, 4, 16, 16), dtype=jnp.float32)
    tgt = (jax.random.uniform(k2, (2, 4, 16, 16)) > 0.5).astype(jnp.float32)
    loss = jax.block_until_ready(
        combo_loss(x, tgt, alpha=0.5, ce_ratio=0.5, smooth=1.0))
    ref = jax.block_until_ready(_combo_loss_ref(x, tgt))
    assert np.allclose(np.asarray(loss), np.asarray(ref),
                       rtol=1e-5, atol=1e-5), (loss, ref)

    # Secondary shape: flat size not a multiple of 128 / tile -> exercises the
    # in-kernel boundary mask and the scalar-finalize with non-default params.
    x2 = jax.random.normal(k3, (2, 4, 15, 15), dtype=jnp.float32)
    t2 = (jax.random.uniform(k4, (2, 4, 15, 15)) > 0.5).astype(jnp.float32)
    loss2 = jax.block_until_ready(
        combo_loss(x2, t2, alpha=0.3, ce_ratio=0.7, smooth=1.0))
    ref2 = jax.block_until_ready(
        _combo_loss_ref(x2, t2, alpha=0.3, ce_ratio=0.7, smooth=1.0))
    assert np.allclose(np.asarray(loss2), np.asarray(ref2),
                       rtol=1e-5, atol=1e-5), (loss2, ref2)

    print("KERNEL_OK")
</pallas_src>

<mosaic_0001>
module attributes {stable_mosaic.version = 11 : i64} {
  func.func @_combo_partial_kernel(%arg0: i32, %arg1: i32, %arg2: memref<16x128xf32, #tpu.memory_space<vmem>>, %arg3: memref<16x128xf32, #tpu.memory_space<vmem>>, %arg4: memref<1x5x8x128xf32, #tpu.memory_space<vmem>>, %arg5: memref<5x8x128xf32, #tpu.memory_space<vmem>>) attributes {dimension_semantics = [#tpu.dimension_semantics<parallel>, #tpu.dimension_semantics<arbitrary>], iteration_bounds = array<i64: 1, 1>, scalar_prefetch = 0 : i64, scratch_operands = 1 : i64, tpu.core_type = #tpu.core_type<tc>, window_params = [{transform_indices = @transform_0, window_bounds = array<i64: 16, 128>}, {transform_indices = @transform_1, window_bounds = array<i64: 16, 128>}, {transform_indices = @transform_2, window_bounds = array<i64: 1, 5, 8, 128>}]} {
    %c0_i32 = arith.constant 0 : i32
    %0 = arith.cmpi eq, %arg1, %c0_i32 : i32
    %1 = arith.extui %0 : i1 to i32
    %c0_i32_0 = arith.constant 0 : i32
    %2 = arith.cmpi ne, %1, %c0_i32_0 : i32
    scf.if %2 {
      %cst_48 = arith.constant 0.000000e+00 : f32
      %79 = vector.broadcast %cst_48 : f32 to vector<5x8x128xf32>
      %c0_49 = arith.constant 0 : index
      %c0_50 = arith.constant 0 : index
      %c0_51 = arith.constant 0 : index
      %80 = vector.load %arg5[%c0_49, %c0_50, %c0_51] : memref<5x8x128xf32, #tpu.memory_space<vmem>>, vector<5x8x128xf32>
      tpu.vector_store %arg5[%c0_49, %c0_50, %c0_51], %79 {strides = array<i32>} : memref<5x8x128xf32, #tpu.memory_space<vmem>>, vector<5x8x128xf32>,
    } else {
    }
    %cst = arith.constant 0.000000e+00 : f32
    %3 = vector.broadcast %cst : f32 to vector<8x128xf32>
    %cst_1 = arith.constant 0.000000e+00 : f32
    %4 = vector.broadcast %cst_1 : f32 to vector<8x128xf32>
    %cst_2 = arith.constant 0.000000e+00 : f32
    %5 = vector.broadcast %cst_2 : f32 to vector<8x128xf32>
    %cst_3 = arith.constant 0.000000e+00 : f32
    %6 = vector.broadcast %cst_3 : f32 to vector<8x128xf32>
    %cst_4 = arith.constant 0.000000e+00 : f32
    %7 = vector.broadcast %cst_4 : f32 to vector<8x128xf32>
    %c0 = arith.constant 0 : index
    %c0_5 = arith.constant 0 : index
    %8 = vector.load %arg2[%c0, %c0_5] : memref<16x128xf32, #tpu.memory_space<vmem>>, vector<16x128xf32>
    %c0_6 = arith.constant 0 : index
    %c0_7 = arith.constant 0 : index
    %9 = vector.load %arg3[%c0_6, %c0_7] : memref<16x128xf32, #tpu.memory_space<vmem>>, vector<16x128xf32>
    %cst_8 = arith.constant -16.1180954 : f32
    %cst_9 = arith.constant 16.1180954 : f32
    %10 = vector.broadcast %cst_8 : f32 to vector<16x128xf32>
    %11 = arith.maximumf %10, %8 : vector<16x128xf32>
    %12 = vector.broadcast %cst_9 : f32 to vector<16x128xf32>
    %13 = arith.minimumf %12, %11 : vector<16x128xf32>
    %cst_10 = arith.constant 0.000000e+00 : f32
    %14 = vector.broadcast %cst_10 : f32 to vector<16x128xf32>
    %15 = arith.subf %14, %13 : vector<16x128xf32>
    %16 = math.exp %15 : vector<16x128xf32>
    %cst_11 = arith.constant 1.000000e+00 : f32
    %17 = vector.broadcast %cst_11 : f32 to vector<16x128xf32>
    %18 = arith.addf %17, %16 : vector<16x128xf32>
    %19 = math.log %18 : vector<16x128xf32>
    %cst_12 = arith.constant 0.000000e+00 : f32
    %20 = vector.broadcast %cst_12 : f32 to vector<16x128xf32>
    %21 = arith.subf %20, %19 : vector<16x128xf32>
    %cst_13 = arith.constant 0.000000e+00 : f32
    %22 = vector.broadcast %cst_13 : f32 to vector<16x128xf32>
    %23 = arith.subf %22, %13 : vector<16x128xf32>
    %24 = arith.subf %23, %19 : vector<16x128xf32>
    %25 = math.exp %21 : vector<16x128xf32>
    %cst_14 = arith.constant 1.000000e+00 : f32
    %26 = vector.broadcast %cst_14 : f32 to vector<16x128xf32>
    %27 = arith.subf %26, %9 : vector<16x128xf32>
    %28 = arith.mulf %27, %24 : vector<16x128xf32>
    %29 = arith.mulf %25, %9 : vector<16x128xf32>
    %30 = vector.shape_cast %29 : vector<16x128xf32> to vector<2x8x128xf32>
    %cst_15 = arith.constant dense<0.000000e+00> : vector<8x128xf32>
    %31 = vector.multi_reduction <add>, %30, %cst_15 [0] : vector<2x8x128xf32> to vector<8x128xf32>
    %32 = vector.shape_cast %25 : vector<16x128xf32> to vector<2x8x128xf32>
    %cst_16 = arith.constant dense<0.000000e+00> : vector<8x128xf32>
    %33 = vector.multi_reduction <add>, %32, %cst_16 [0] : vector<2x8x128xf32> to vector<8x128xf32>
    %34 = vector.shape_cast %9 : vector<16x128xf32> to vector<2x8x128xf32>
    %cst_17 = arith.constant dense<0.000000e+00> : vector<8x128xf32>
    %35 = vector.multi_reduction <add>, %34, %cst_17 [0] : vector<2x8x128xf32> to vector<8x128xf32>
    %36 = arith.mulf %9, %21 : vector<16x128xf32>
    %37 = vector.shape_cast %36 : vector<16x128xf32> to vector<2x8x128xf32>
    %cst_18 = arith.constant dense<0.000000e+00> : vector<8x128xf32>
    %38 = vector.multi_reduction <add>, %37, %cst_18 [0] : vector<2x8x128xf32> to vector<8x128xf32>
    %39 = vector.shape_cast %28 : vector<16x128xf32> to vector<2x8x128xf32>
    %cst_19 = arith.constant dense<0.000000e+00> : vector<8x128xf32>
    %40 = vector.multi_reduction <add>, %39, %cst_19 [0] : vector<2x8x128xf32> to vector<8x128xf32>
    %41 = arith.addf %3, %31 : vector<8x128xf32>
    %42 = arith.addf %4, %33 : vector<8x128xf32>
    %43 = arith.addf %5, %35 : vector<8x128xf32>
    %44 = arith.addf %6, %38 : vector<8x128xf32>
    %45 = arith.addf %7, %40 : vector<8x128xf32>
    %c0_20 = arith.constant 0 : index
    %c0_21 = arith.constant 0 : index
    %c0_22 = arith.constant 0 : index
    %46 = vector.load %arg5[%c0_20, %c0_21, %c0_22] : memref<5x8x128xf32, #tpu.memory_space<vmem>>, vector<1x8x128xf32>
    %47 = vector.shape_cast %46 : vector<1x8x128xf32> to vector<8x128xf32>
    %48 = arith.addf %47, %41 : vector<8x128xf32>
    %c0_23 = arith.constant 0 : index
    %c0_24 = arith.constant 0 : index
    %c0_25 = arith.constant 0 : index
    %49 = vector.load %arg5[%c0_23, %c0_24, %c0_25] : memref<5x8x128xf32, #tpu.memory_space<vmem>>, vector<1x8x128xf32>
    %50 = vector.shape_cast %49 : vector<1x8x128xf32> to vector<8x128xf32>
    %51 = vector.shape_cast %48 : vector<8x128xf32> to vector<1x8x128xf32>
    tpu.vector_store %arg5[%c0_23, %c0_24, %c0_25], %51 {strides = array<i32>} : memref<5x8x128xf32, #tpu.memory_space<vmem>>, vector<1x8x128xf32>,
    %c1 = arith.constant 1 : index
    %c0_26 = arith.constant 0 : index
    %c0_27 = arith.constant 0 : index
    %52 = vector.load %arg5[%c1, %c0_26, %c0_27] : memref<5x8x128xf32, #tpu.memory_space<vmem>>, vector<1x8x128xf32>
    %53 = vector.shape_cast %52 : vector<1x8x128xf32> to vector<8x128xf32>
    %54 = arith.addf %53, %42 : vector<8x128xf32>
    %c1_28 = arith.constant 1 : index
    %c0_29 = arith.constant 0 : index
    %c0_30 = arith.constant 0 : index
    %55 = vector.load %arg5[%c1_28, %c0_29, %c0_30] : memref<5x8x128xf32, #tpu.memory_space<vmem>>, vector<1x8x128xf32>
    %56 = vector.shape_cast %55 : vector<1x8x128xf32> to vector<8x128xf32>
    %57 = vector.shape_cast %54 : vector<8x128xf32> to vector<1x8x128xf32>
    tpu.vector_store %arg5[%c1_28, %c0_29, %c0_30], %57 {strides = array<i32>} : memref<5x8x128xf32, #tpu.memory_space<vmem>>, vector<1x8x128xf32>,
    %c2 = arith.constant 2 : index
    %c0_31 = arith.constant 0 : index
    %c0_32 = arith.constant 0 : index
    %58 = vector.load %arg5[%c2, %c0_31, %c0_32] : memref<5x8x128xf32, #tpu.memory_space<vmem>>, vector<1x8x128xf32>
    %59 = vector.shape_cast %58 : vector<1x8x128xf32> to vector<8x128xf32>
    %60 = arith.addf %59, %43 : vector<8x128xf32>
    %c2_33 = arith.constant 2 : index
    %c0_34 = arith.constant 0 : index
    %c0_35 = arith.constant 0 : index
    %61 = vector.load %arg5[%c2_33, %c0_34, %c0_35] : memref<5x8x128xf32, #tpu.memory_space<vmem>>, vector<1x8x128xf32>
    %62 = vector.shape_cast %61 : vector<1x8x128xf32> to vector<8x128xf32>
    %63 = vector.shape_cast %60 : vector<8x128xf32> to vector<1x8x128xf32>
    tpu.vector_store %arg5[%c2_33, %c0_34, %c0_35], %63 {strides = array<i32>} : memref<5x8x128xf32, #tpu.memory_space<vmem>>, vector<1x8x128xf32>,
    %c3 = arith.constant 3 : index
    %c0_36 = arith.constant 0 : index
    %c0_37 = arith.constant 0 : index
    %64 = vector.load %arg5[%c3, %c0_36, %c0_37] : memref<5x8x128xf32, #tpu.memory_space<vmem>>, vector<1x8x128xf32>
    %65 = vector.shape_cast %64 : vector<1x8x128xf32> to vector<8x128xf32>
    %66 = arith.addf %65, %44 : vector<8x128xf32>
    %c3_38 = arith.constant 3 : index
    %c0_39 = arith.constant 0 : index
    %c0_40 = arith.constant 0 : index
    %67 = vector.load %arg5[%c3_38, %c0_39, %c0_40] : memref<5x8x128xf32, #tpu.memory_space<vmem>>, vector<1x8x128xf32>
    %68 = vector.shape_cast %67 : vector<1x8x128xf32> to vector<8x128xf32>
    %69 = vector.shape_cast %66 : vector<8x128xf32> to vector<1x8x128xf32>
    tpu.vector_store %arg5[%c3_38, %c0_39, %c0_40], %69 {strides = array<i32>} : memref<5x8x128xf32, #tpu.memory_space<vmem>>, vector<1x8x128xf32>,
    %c4 = arith.constant 4 : index
    %c0_41 = arith.constant 0 : index
    %c0_42 = arith.constant 0 : index
    %70 = vector.load %arg5[%c4, %c0_41, %c0_42] : memref<5x8x128xf32, #tpu.memory_space<vmem>>, vector<1x8x128xf32>
    %71 = vector.shape_cast %70 : vector<1x8x128xf32> to vector<8x128xf32>
    %72 = arith.addf %71, %45 : vector<8x128xf32>
    %c4_43 = arith.constant 4 : index
    %c0_44 = arith.constant 0 : index
    %c0_45 = arith.constant 0 : index
    %73 = vector.load %arg5[%c4_43, %c0_44, %c0_45] : memref<5x8x128xf32, #tpu.memory_space<vmem>>, vector<1x8x128xf32>
    %74 = vector.shape_cast %73 : vector<1x8x128xf32> to vector<8x128xf32>
    %75 = vector.shape_cast %72 : vector<8x128xf32> to vector<1x8x128xf32>
    tpu.vector_store %arg5[%c4_43, %c0_44, %c0_45], %75 {strides = array<i32>} : memref<5x8x128xf32, #tpu.memory_space<vmem>>, vector<1x8x128xf32>,
    %c0_i32_46 = arith.constant 0 : i32
    %76 = arith.cmpi eq, %arg1, %c0_i32_46 : i32
    %77 = arith.extui %76 : i1 to i32
    %c0_i32_47 = arith.constant 0 : i32
    %78 = arith.cmpi ne, %77, %c0_i32_47 : i32
    scf.if %78 {
      %c0_48 = arith.constant 0 : index
      %c0_49 = arith.constant 0 : index
      %c0_50 = arith.constant 0 : index
      %79 = vector.load %arg5[%c0_48, %c0_49, %c0_50] : memref<5x8x128xf32, #tpu.memory_space<vmem>>, vector<5x8x128xf32>
      %c0_51 = arith.constant 0 : index
      %c0_52 = arith.constant 0 : index
      %c0_53 = arith.constant 0 : index
      %c0_54 = arith.constant 0 : index
      %80 = vector.load %arg4[%c0_51, %c0_52, %c0_53, %c0_54] : memref<1x5x8x128xf32, #tpu.memory_space<vmem>>, vector<1x5x8x128xf32>
      %81 = vector.shape_cast %80 : vector<1x5x8x128xf32> to vector<5x8x128xf32>
      %82 = vector.shape_cast %79 : vector<5x8x128xf32> to vector<1x5x8x128xf32>
      tpu.vector_store %arg4[%c0_51, %c0_52, %c0_53, %c0_54], %82 {strides = array<i32>} : memref<1x5x8x128xf32, #tpu.memory_space<vmem>>, vector<1x5x8x128xf32>,
    } else {
    }
    return
  }
  func.func @transform_0(%arg0: i32, %arg1: i32) -> (i32, i32) {
    %c1_i32 = arith.constant 1 : i32
    %0 = arith.muli %arg0, %c1_i32 : i32
    %1 = arith.addi %0, %arg1 : i32
    %c0_i32 = arith.constant 0 : i32
    %2 = arith.minsi %1, %c0_i32 : i32
    %c0_i32_0 = arith.constant 0 : i32
    %c0_i32_1 = arith.constant 0 : i32
    return %2, %c0_i32_0 : i32, i32
  }
  func.func @transform_1(%arg0: i32, %arg1: i32) -> (i32, i32) {
    %c1_i32 = arith.constant 1 : i32
    %0 = arith.muli %arg0, %c1_i32 : i32
    %1 = arith.addi %0, %arg1 : i32
    %c0_i32 = arith.constant 0 : i32
    %2 = arith.minsi %1, %c0_i32 : i32
    %c0_i32_0 = arith.constant 0 : i32
    %c0_i32_1 = arith.constant 0 : i32
    return %2, %c0_i32_0 : i32, i32
  }
  func.func @transform_2(%arg0: i32, %arg1: i32) -> (i32, i32, i32, i32) {
    %c0_i32 = arith.constant 0 : i32
    %c0_i32_0 = arith.constant 0 : i32
    %c0_i32_1 = arith.constant 0 : i32
    %c0_i32_2 = arith.constant 0 : i32
    return %arg0, %c0_i32, %c0_i32_0, %c0_i32_1 : i32, i32, i32, i32
  }
}

</mosaic_0001>

<bundles_post_ra>
// kernel: tpu_custom_call.1
= control target key start
LH: loop header
LB: loop body
LE: loop exit
PB: predicated region body
PF: predicated region fallthrough
CT: control target
= control target key end

     0   :  { %7 = vsyncpa [#allocation4], 0  ;;  %s292_s0 = inlined_call_operand.hbm [shape: f32[16,128], index: 0, kind: input, shape index: {}]   ;;  %s293_s1 = inlined_call_operand.hbm [shape: f32[16,128], index: 1, kind: input, shape index: {}]   ;;  %s294_s2 = inlined_call_operand.hbm [shape: f32[1,5,8,128], index: 2, kind: output, shape index: {}]  }
   0x1   :  { %8 = vsyncpa [#allocation7], 0 }
   0x2   :  { %9 = vsyncpa [#allocation5], 0  ;;  %s254_s9 = smov [#allocation3]  }
   0x3   :  { %s21_s10 = sshll.u32 %s254_s9, 4  ;;  %s22_s10 = int_to_ptr.vmem [resolvable:$true] %s21_s10 }
   0x4   :  { %s196_s11 = scalar_lea.vmem %s22_s10, 256  ;;  %p201_p1 = scmp.lt.s32.totalorder %s22_s10, %s22_s10 }
   0x5   :  { %p197_p0 = scmp.ne.s32.totalorder %s22_s10, %s196_s11  ;;  %p202_p2 = scmp.lt.s32.totalorder %s196_s11, %s196_s11 }
   0x7   :  { %p203_p3 = por %p202_p2, %p201_p1 }
   0x9   :  { %p204_p4 = pnand %p203_p3, %p197_p0 }
   0xb   :  { %207 = shalt.err (!%p204_p4)
}
   0xc   :  { %s255_s12 = smov 128   ;;  %s256_s13 = smov 8  }
   0xd   :  { %27 = dma.hbm_to_vmem [thread:$0]  %s292_s0, 256, %s22_s10, [#allocation4], %s255_s12, %s255_s12, %s256_s13  }
   0xe   :  { %s257_s16 = smov [#allocation6]  }
   0xf   :  { %s39_s17 = sshll.u32 %s257_s16, 4  ;;  %s40_s17 = int_to_ptr.vmem [resolvable:$true] %s39_s17 }
  0x10   :  { %s216_s18 = scalar_lea.vmem %s40_s17, 256  ;;  %p221_p6 = scmp.lt.s32.totalorder %s40_s17, %s40_s17 }
  0x11   :  { %p217_p5 = scmp.ne.s32.totalorder %s40_s17, %s216_s18  ;;  %p222_p7 = scmp.lt.s32.totalorder %s216_s18, %s216_s18 }
  0x13   :  { %p223_p8 = por %p222_p7, %p221_p6 }
  0x15   :  { %p224_p9 = pnand %p223_p8, %p217_p5 }
  0x17   :  { %227 = shalt.err (!%p224_p9)
}
  0x18   :  { %45 = dma.hbm_to_vmem [thread:$0]  %s293_s1, 256, %s40_s17, [#allocation7], %s255_s12, %s255_s12, %s256_s13  }
  0x19   :  { %248 = dma.done.wait [#allocation4], 256  }
  0x1a   :  { %249 = vsyncadd [#allocation4], 4294967040 }
  0x1b   :  { %250 = dma.done.wait [#allocation7], 256  }
  0x1c   :  { %251 = vsyncadd [#allocation7], 4294967040  ;;  %v69_v0 = vld [vmem:[#allocation3] sm:$0xff]  ;;  %v70_v1 = vld [vmem:[#allocation3 + $0x8] sm:$0xff]  ;;  %s258_s0 = smov [#allocation8]  }
  0x1d   :  { %v71_v2 = vld [vmem:[#allocation6] sm:$0xff]  ;;  %v72_v3 = vld [vmem:[#allocation6 + $0x8] sm:$0xff]  ;;  %v169_v4 = vclamps-f32 %v69_v0, 16.118095  ;;  %v170_v5 = vclamps-f32 %v70_v1, 16.118095 }
  0x1e   :  { %v105_v6 = vadd.f32 %v72_v3, %v71_v2  ;;  %v97_v18 = vsub.f32 1.0, %v71_v2  ;;  %v98_v20 = vsub.f32 1.0, %v72_v3  ;;  %s152_s1 = sshll.u32 %s258_s0, 4  ;;  %s153_s1 = int_to_ptr.vmem [resolvable:$true] %s152_s1 }
  0x1f   :  { %v77_v7 = vsub.f32 0.0, %v169_v4  ;;  %v78_v8 = vsub.f32 0.0, %v170_v5  ;;  %s228_s21 = scalar_lea.vmem %s153_s1, 640  ;;  %p233_p11 = scmp.lt.s32.totalorder %s153_s1, %s153_s1 }
  0x20   :  { %144 = vst [vmem:[#allocation8 + $0x10] sm:$0xff] %v105_v6  ;;  %p229_p10 = scmp.ne.s32.totalorder %s153_s1, %s228_s21  ;;  %p234_p12 = scmp.lt.s32.totalorder %s228_s21, %s228_s21 }
  0x21   :  { %v79_v9 = vmul.f32 1.442695, %v77_v7  ;;  %v81_v10 = vmul.f32 1.442695, %v78_v8 }
  0x22   :  { %p235_p13 = por %p234_p12, %p233_p11 }
  0x23   :  { %176 = vpow2.f32 %v79_v9 }
  0x24   :  { %178 = vpow2.f32 %v81_v10  ;;  %p236_p0 = pnand %p235_p13, %p229_p10 }
  0x30   :  { %v177_v11 = vpop.eup %176 }
  0x31   :  { %v179_v12 = vpop.eup %178  ;;  %v83_v13 = vadd.f32 1.0, %v177_v11 }
  0x32   :  { %v84_v14 = vadd.f32 1.0, %v179_v12 }
  0x33   :  { %180 = vlog2.f32 %v83_v13 }
  0x34   :  { %182 = vlog2.f32 %v84_v14 }
  0x40   :  { %v181_v15 = vpop.eup %180 }
  0x41   :  { %v183_v16 = vpop.eup %182  ;;  %v86_v17 = vmul.f32 0.6931472, %v181_v15 }
  0x42   :  { %v88_v19 = vmul.f32 0.6931472, %v183_v16 }
  0x43   :  { %v89_v21 = vsub.f32 0.0, %v86_v17  ;;  %v91_v22 = vsub.f32 %v77_v7, %v86_v17 }
  0x44   :  { %v90_v23 = vsub.f32 0.0, %v88_v19  ;;  %v92_v24 = vsub.f32 %v78_v8, %v88_v19 }
  0x45   :  { %v93_v25 = vmul.f32 1.442695, %v89_v21  ;;  %v106_v26 = vmul.f32 %v89_v21, %v71_v2  ;;  %v99_v27 = vmul.f32 %v97_v18, %v91_v22 }
  0x46   :  { %v95_v28 = vmul.f32 1.442695, %v90_v23  ;;  %v107_v29 = vmul.f32 %v90_v23, %v72_v3  ;;  %v100_v30 = vmul.f32 %v98_v20, %v92_v24 }
  0x47   :  { %184 = vpow2.f32 %v93_v25 }
  0x48   :  { %186 = vpow2.f32 %v95_v28  ;;  %v108_v31 = vadd.f32 %v107_v29, %v106_v26  ;;  %v109_v32 = vadd.f32 %v100_v30, %v99_v27 }
  0x4a   :  { %145 = vst [vmem:[#allocation8 + $0x18] sm:$0xff] %v108_v31  ;;  %146 = vst [vmem:[#allocation8 + $0x20] sm:$0xff] %v109_v32 }
  0x54   :  { %v185_v33 = vpop.eup %184 }
  0x55   :  { %v187_v34 = vpop.eup %186  ;;  %v101_v35 = vmul.f32 %v185_v33, %v71_v2 }
  0x56   :  { %v102_v36 = vmul.f32 %v187_v34, %v72_v3  ;;  %v104_v37 = vadd.f32 %v187_v34, %v185_v33 }
  0x58   :  { %v103_v38 = vadd.f32 %v102_v36, %v101_v35  ;;  %143 = vst [vmem:[#allocation8 + $0x8] sm:$0xff] %v104_v37 }
  0x5a   :  { %142 = vst [vmem:[#allocation8] sm:$0xff] %v103_v38 }
  0x5b   :  { %239 = shalt.err (!%p236_p0)
}
  0x5c   :  { %158 = dma.vmem_to_hbm [thread:$0]  %s153_s1, 640, %s294_s2, [#allocation5], %s255_s12, %s255_s12, %s256_s13  }
  0x5d   :  { %252 = dma.done.wait [#allocation5], 640  }
  0x5e   :  { %253 = vsyncadd [#allocation5], 4294966656 }
  0x5f   :  { %162 = vsyncpa [#allocation4], 1 }
  0x60   :  { %163 = vsyncpa [#allocation7], 1 }
  0x61   :  { %164 = vsyncpa [#allocation5], 1 }

</bundles_post_ra>
